<compile_context>
chip_gen: v7x
topology: tpu7x:2x2x1
jax: 0.10.0
libtpu: 0.0.40
codegen_flags: <defaults>
</compile_context>

<pallas_src>
import functools
import math

import jax
import jax.numpy as jnp
from jax.experimental import pallas as pl
from jax.experimental.pallas import tpu as pltpu

_LANE = 128


def _lcm(a, b):
    return a * b // math.gcd(a, b)


def _round_up(x, m):
    return ((x + m - 1) // m) * m


def _zero_map(rank):
    def zero(i):
        return (0,) * rank
    return zero


# ----------------------------------------------------------------------------
# Glue: Chebyshev basis (tiny sequential (N,N) matmuls, kept in plain JAX).
# Returns the TRANSPOSED non-identity basis: gT[k-1] = G_k^T for k = 1..K-1.
# ----------------------------------------------------------------------------
def _cheby_basis_T(G, cheby_k):
    n = G.shape[0]
    if cheby_k <= 1:
        return jnp.zeros((1, n, n), G.dtype)          # dummy; never read
    gs = [jnp.eye(n, dtype=G.dtype), G]
    for _ in range(2, cheby_k):
        gs.append(2.0 * (G @ gs[-1]) - gs[-2])
    return jnp.stack([g.T for g in gs[1:cheby_k]], axis=0)   # (K-1, N, N)


# ----------------------------------------------------------------------------
# Pallas kernels (batch folded into lanes; one batch tile per grid step)
# ----------------------------------------------------------------------------
def _gc_kernel_plain(x_ref, g_ref, w_ref, b_ref, o_ref, *, cheby_k, kappa):
    x = x_ref[0]                                        # (N, bt*H_in) bf16
    kx = kappa * x.astype(jnp.float32)                  # hoisted affine term
    h = x.astype(jnp.float32)                           # hop 0: identity == x
    for k in range(1, cheby_k):
        h = kx + (1.0 - kappa) * jnp.dot(
            g_ref[k - 1], h.astype(jnp.bfloat16),
            preferred_element_type=jnp.float32)
    out = jnp.dot(h.astype(jnp.bfloat16), w_ref[...],   # block-diag projection
                  preferred_element_type=jnp.float32) + b_ref[...]
    o_ref[0] = out.astype(o_ref.dtype)                  # single lane-dense store


def _gc_kernel_mixhop(x_ref, g_ref, w_ref, b_ref, o_ref, *, cheby_k, kappa):
    x = x_ref[0]                                        # (N, bt*H_in) bf16
    kx = kappa * x.astype(jnp.float32)
    # Hop 0 (identity): h_0 == x; project and accumulate immediately (streamed,
    # no K-long list of live hop tensors).
    acc = b_ref[...] + jnp.dot(x, w_ref[0], preferred_element_type=jnp.float32)
    for k in range(1, cheby_k):
        h = kx + (1.0 - kappa) * jnp.dot(
            g_ref[k - 1], x, preferred_element_type=jnp.float32)
        acc = acc + jnp.dot(h.astype(jnp.bfloat16), w_ref[k],
                            preferred_element_type=jnp.float32)
    o_ref[0] = acc.astype(o_ref.dtype)


def _gc_kernel_attention(x_ref, g_ref, wa_ref, e_ref, et_ref, w_ref, b_ref,
                         o_ref, *, cheby_k, kappa):
    x = x_ref[0]                                        # (N, bt*H_in) bf16
    xf = x.astype(jnp.float32)
    kx = kappa * xf
    wa = wa_ref[...]                                    # (N, bt*H_in)  f32
    fold = e_ref[...]                                   # (bt*H_in, bt) f32
    unfold = et_ref[...]                                # (bt, bt*H_in) f32

    def logits_of(h):                                   # -> (1, bt)
        r = jnp.sum(h * wa, axis=0, keepdims=True)      # sublane reduction
        return jnp.dot(r, fold, preferred_element_type=jnp.float32)

    def expand(v):                                      # (1, bt) -> (1, bt*H_in)
        return jnp.dot(v, unfold, preferred_element_type=jnp.float32)

    # Online softmax over the K hops: only the current hop and the accumulator
    # are live.  (b_att is dropped: a constant logit offset cancels in softmax.)
    h = xf                                              # hop 0: identity == x
    m = logits_of(h)
    l = jnp.ones_like(m)
    acc = h
    for k in range(1, cheby_k):
        h = kx + (1.0 - kappa) * jnp.dot(
            g_ref[k - 1], x, preferred_element_type=jnp.float32)
        lg = logits_of(h)
        m_new = jnp.maximum(m, lg)
        a = jnp.exp(m - m_new)
        p = jnp.exp(lg - m_new)
        l = a * l + p
        acc = acc * expand(a) + expand(p) * h
        m = m_new
    mixed = acc * expand(1.0 / l)                       # exact normalization
    out = jnp.dot(mixed.astype(jnp.bfloat16), w_ref[...],
                  preferred_element_type=jnp.float32) + b_ref[...]
    o_ref[0] = out.astype(o_ref.dtype)


# ----------------------------------------------------------------------------
# Wrapper
# ----------------------------------------------------------------------------
def graph_convol(x, G, params, *, cheby_k, kappa, agg_opt, batch_tile=None):
    B, N, H_in = x.shape
    H_out = params["w"].shape[-1]
    f32, bf16 = jnp.float32, jnp.bfloat16

    # ---- batch-tile selection: bt*H_in and bt*H_out lane-aligned -----------
    align = _lcm(_LANE // math.gcd(_LANE, H_in), _LANE // math.gcd(_LANE, H_out))

    def _vmem_bytes(bt_):
        w_in_ = bt_ * H_in
        w_out_ = _round_up(bt_ * H_out, _LANE)
        n_g = max(cheby_k - 1, 1)
        n_w = cheby_k if agg_opt == "mixhop" else 1
        const = 2 * n_g * N * N + 2 * n_w * w_in_ * w_out_ + 4 * w_out_
        if agg_opt == "attention":
            const += 4 * (N * w_in_ + 2 * bt_ * w_in_)
        blocks = 2 * (2 * N * w_in_ + 4 * N * w_out_)    # double-buffered x/out
        live = 4 * 4 * N * max(w_in_, w_out_)            # f32 temporaries
        return const + blocks + live

    try:
        vmem_cap = int(pltpu.get_tpu_info().vmem_capacity_bytes)
    except Exception:
        vmem_cap = 64 << 20                              # conservative (v7x)
    budget = max(vmem_cap - (16 << 20), 24 << 20)

    if batch_tile is not None:
        bt = max(1, int(batch_tile))
    else:
        # Whole (padded) batch in one grid step when it fits (best on v5e/v6e);
        # shrink toward `align` when VMEM would overflow (v7x: 64 MiB).
        # TODO(synk): on v7x, large-B callers should pass batch_tile so that
        # num_bt >= 2 and the "parallel" axis spans both TensorCores.
        bt = _round_up(B, align)
        while bt > align and _vmem_bytes(bt) > budget:
            bt = max(align, _round_up(bt // 2, align))
    num_bt = pl.cdiv(B, bt)
    Bp = num_bt * bt
    W_in = bt * H_in
    W_out = bt * H_out
    W_out_pad = _round_up(W_out, _LANE)

    # ---- transposed Chebyshev basis (identity hop skipped), bf16 -----------
    gT = _cheby_basis_T(G.astype(f32), cheby_k).astype(bf16)

    # ---- fold batch into lanes: (B,N,H) -> (num_bt, N, bt*H_in), bf16 ------
    xt = jnp.swapaxes(x.astype(f32), 0, 1)               # (N, B, H_in)
    if Bp != B:
        xt = jnp.pad(xt, ((0, 0), (0, Bp - B), (0, 0)))
    xt = jnp.swapaxes(xt.reshape(N, num_bt, W_in), 0, 1).astype(bf16)

    # ---- block-diagonal projection weights & tiled bias ---------------------
    def _bd(Wk):                                 # (H_in,H_out) -> (W_in,W_out_pad)
        wbd = jnp.kron(jnp.eye(bt, dtype=f32), Wk.astype(f32))
        return jnp.pad(wbd, ((0, 0), (0, W_out_pad - W_out))).astype(bf16)

    w = params["w"].astype(f32)
    b_tiled = jnp.pad(jnp.tile(params["b"].astype(f32), bt),
                      (0, W_out_pad - W_out)).reshape(1, W_out_pad)

    if agg_opt == "plain":
        kern = functools.partial(_gc_kernel_plain, cheby_k=cheby_k, kappa=kappa)
        const_args = (gT, _bd(w), b_tiled)
    elif agg_opt == "mixhop":
        kern = functools.partial(_gc_kernel_mixhop, cheby_k=cheby_k, kappa=kappa)
        w_bd = jnp.stack([_bd(w[k * H_in:(k + 1) * H_in]) for k in range(cheby_k)])
        const_args = (gT, w_bd, b_tiled)
    elif agg_opt == "attention":
        kern = functools.partial(_gc_kernel_attention, cheby_k=cheby_k, kappa=kappa)
        wa = params["w_att"].astype(f32).reshape(N, H_in)   # row-major == torch .view
        wa_tiled = jnp.tile(wa, (1, bt))                     # (N, W_in)
        fold = jnp.kron(jnp.eye(bt, dtype=f32), jnp.ones((H_in, 1), f32))
        unfold = jnp.swapaxes(fold, 0, 1)                    # (bt, W_in)
        const_args = (gT, wa_tiled, fold, unfold, _bd(w), b_tiled)
    else:
        raise NotImplementedError(agg_opt)

    # ---- cost estimate ------------------------------------------------------
    hop_mm = max(cheby_k - 1, 0)
    flops = 2 * num_bt * hop_mm * N * N * W_in
    if agg_opt == "mixhop":
        flops += 2 * num_bt * cheby_k * N * W_in * W_out_pad
    else:
        flops += 2 * num_bt * N * W_in * W_out_pad
    transc = 2 * hop_mm * bt * num_bt if agg_opt == "attention" else 0
    args = (xt, *const_args)
    in_bytes = sum(int(a.size) * a.dtype.itemsize for a in args)
    out_bytes = num_bt * N * W_out_pad * 4
    cost = pl.CostEstimate(flops=int(flops), transcendentals=int(transc),
                           bytes_accessed=int(in_bytes + out_bytes))

    # ---- compiler params (VMEM limit clamped below physical capacity) -------
    cp_kwargs = dict(dimension_semantics=("parallel",))
    vmem_est = _vmem_bytes(bt)
    if vmem_est > (16 << 20):
        cp_kwargs["vmem_limit_bytes"] = int(min(vmem_est + (4 << 20),
                                                vmem_cap - (8 << 20)))

    out_shape = jax.ShapeDtypeStruct((num_bt, N, W_out_pad), f32)
    x_spec = pl.BlockSpec((1, N, W_in), lambda i: (i, 0, 0))
    out_spec = pl.BlockSpec((1, N, W_out_pad), lambda i: (i, 0, 0))

    def _run(buffered_consts):
        def const_spec(shape):
            if buffered_consts:
                return pl.BlockSpec(shape, _zero_map(len(shape)),
                                    pipeline_mode=pl.Buffered(1))
            return pl.BlockSpec(shape, _zero_map(len(shape)))
        in_specs = [x_spec] + [const_spec(a.shape) for a in const_args]
        return pl.pallas_call(
            kern,
            out_shape=out_shape,
            grid=(num_bt,),
            in_specs=in_specs,
            out_specs=out_spec,
            compiler_params=pltpu.CompilerParams(**cp_kwargs),
            cost_estimate=cost,
        )(xt, *const_args)

    try:
        out = _run(True)     # single-buffer the grid-invariant inputs
    except Exception:
        out = _run(False)    # fallback: default double-buffering

    # ---- un-fold: (num_bt, N, bt*H_out[+pad]) -> (B, N, H_out) --------------
    out = out[:, :, :W_out].reshape(num_bt, N, bt, H_out)
    out = out.transpose(0, 2, 1, 3).reshape(Bp, N, H_out)
    return out[:B]


# ----------------------------------------------------------------------------
# Pure-JAX reference (mirrors the PyTorch forward exactly, f32)
# ----------------------------------------------------------------------------
def graph_convol_ref(x, G, params, *, cheby_k, kappa, agg_opt):
    n = G.shape[0]
    gs = [jnp.eye(n, dtype=G.dtype), G]
    for _ in range(2, cheby_k):
        gs.append(2.0 * (G @ gs[-1]) - gs[-2])
    gs = gs[:cheby_k]
    if agg_opt == "plain":
        h = x
        for k in range(cheby_k):
            h = kappa * x + (1.0 - kappa) * jnp.einsum("bnp,nm->bmp", h, gs[k])
        return h @ params["w"] + params["b"]
    elif agg_opt == "mixhop":
        hs = [kappa * x + (1.0 - kappa) * jnp.einsum("bnp,nm->bmp", x, gs[k])
              for k in range(cheby_k)]
        return jnp.concatenate(hs, axis=-1) @ params["w"] + params["b"]
    elif agg_opt == "attention":
        B = x.shape[0]
        hs = [kappa * x + (1.0 - kappa) * jnp.einsum("bnp,nm->bmp", x, gs[k])
              for k in range(cheby_k)]
        att_in = jnp.stack(hs, axis=1).reshape(B, cheby_k, -1)   # (B, K, N*H)
        logits = att_in @ params["w_att"].reshape(-1, 1) + params["b_att"]
        alpha = jax.nn.softmax(logits, axis=1)
        out = (att_in * alpha).sum(axis=1).reshape(B, x.shape[1], -1)
        return out @ params["w"] + params["b"]
    else:
        raise NotImplementedError(agg_opt)


# ----------------------------------------------------------------------------
# Deterministic parameter init (synthetic; no checkpoint load)
# ----------------------------------------------------------------------------
def make_params(key, *, n_node, h_in, h_out, cheby_k, agg_opt):
    k1, k2, k3, k4 = jax.random.split(key, 4)
    in_feat = h_in * cheby_k if agg_opt == "mixhop" else h_in
    params = {
        "w": 0.1 * jax.random.normal(k1, (in_feat, h_out), jnp.float32),
        "b": 0.1 * jax.random.normal(k2, (h_out,), jnp.float32),
    }
    if agg_opt == "attention":
        params["w_att"] = 0.1 * jax.random.normal(k3, (n_node * h_in,), jnp.float32)
        params["b_att"] = 0.1 * jax.random.normal(k4, (), jnp.float32)
    return params


if __name__ == "__main__":
    B, N, H_IN, H_OUT, K = 2, 8, 16, 32, 3
    KAPPA = 0.05

    key = jax.random.PRNGKey(0)
    kx, kg, kp = jax.random.split(key, 3)
    x = jax.random.normal(kx, (B, N, H_IN), jnp.float32)
    # Row-normalized random graph support.
    G = jax.nn.softmax(jax.random.normal(kg, (N, N), jnp.float32), axis=-1)

    for agg_opt in ("plain", "mixhop", "attention"):
        params = make_params(kp, n_node=N, h_in=H_IN, h_out=H_OUT,
                             cheby_k=K, agg_opt=agg_opt)
        ref = graph_convol_ref(x, G, params, cheby_k=K, kappa=KAPPA,
                               agg_opt=agg_opt)
        # Default: lane-aligned folded batch in one grid step; also exercise
        # the multi-step grid (parallel axis) path with batch_tile=1.
        for bt in (None, 1):
            out = graph_convol(x, G, params, cheby_k=K, kappa=KAPPA,
                               agg_opt=agg_opt, batch_tile=bt)
            out = jax.block_until_ready(out)
            assert out.shape == (B, N, H_OUT), (agg_opt, bt, out.shape)
            assert jnp.allclose(out, ref, rtol=2e-2, atol=2e-2), \
                f"mismatch in {agg_opt} (batch_tile={bt})"

    print("KERNEL_OK")
</pallas_src>

<mosaic_0001>
module attributes {stable_mosaic.version = 11 : i64} {
  func.func @_gc_kernel_plain(%arg0: i32, %arg1: memref<1x8x128xbf16, #tpu.memory_space<vmem>>, %arg2: memref<2x8x8xbf16, #tpu.memory_space<vmem>>, %arg3: memref<128x256xbf16, #tpu.memory_space<vmem>>, %arg4: memref<1x256xf32, #tpu.memory_space<vmem>>, %arg5: memref<1x8x256xf32, #tpu.memory_space<vmem>>) attributes {dimension_semantics = [#tpu.dimension_semantics<parallel>], iteration_bounds = array<i64: 1>, scalar_prefetch = 0 : i64, scratch_operands = 0 : i64, tpu.core_type = #tpu.core_type<tc>, window_params = [{transform_indices = @transform_0, window_bounds = array<i64: 1, 8, 128>}, {pipeline_mode = #tpu.pipeline_mode<synchronous>, transform_indices = @transform_1, window_bounds = array<i64: 2, 8, 8>}, {pipeline_mode = #tpu.pipeline_mode<synchronous>, transform_indices = @transform_2, window_bounds = array<i64: 128, 256>}, {pipeline_mode = #tpu.pipeline_mode<synchronous>, transform_indices = @transform_3, window_bounds = array<i64: 1, 256>}, {transform_indices = @transform_4, window_bounds = array<i64: 1, 8, 256>}]} {
    %c0 = arith.constant 0 : index
    %c0_0 = arith.constant 0 : index
    %c0_1 = arith.constant 0 : index
    %0 = vector.load %arg1[%c0, %c0_0, %c0_1] : memref<1x8x128xbf16, #tpu.memory_space<vmem>>, vector<1x8x128xbf16>
    %1 = vector.shape_cast %0 : vector<1x8x128xbf16> to vector<8x128xbf16>
    %2 = arith.extf %1 : vector<8x128xbf16> to vector<8x128xf32>
    %cst = arith.constant 5.000000e-02 : f32
    %3 = vector.broadcast %cst : f32 to vector<8x128xf32>
    %4 = arith.mulf %3, %2 : vector<8x128xf32>
    %5 = arith.extf %1 : vector<8x128xbf16> to vector<8x128xf32>
    %c0_2 = arith.constant 0 : index
    %c0_3 = arith.constant 0 : index
    %c0_4 = arith.constant 0 : index
    %6 = vector.load %arg2[%c0_2, %c0_3, %c0_4] : memref<2x8x8xbf16, #tpu.memory_space<vmem>>, vector<1x8x8xbf16>
    %7 = vector.shape_cast %6 : vector<1x8x8xbf16> to vector<8x8xbf16>
    %8 = arith.truncf %5 : vector<8x128xf32> to vector<8x128xbf16>
    %cst_5 = arith.constant dense<0.000000e+00> : vector<8x128xf32>
    %9 = tpu.matmul %7, %8, %cst_5 {dimension_numbers = #tpu.dot_dimension_numbers<[1], [0], [0], [1], [0, 0, 1, 1], [], []>} : vector<8x8xbf16>, vector<8x128xbf16>, vector<8x128xf32> -> vector<8x128xf32>
    %cst_6 = arith.constant 0.949999988 : f32
    %10 = vector.broadcast %cst_6 : f32 to vector<8x128xf32>
    %11 = arith.mulf %10, %9 : vector<8x128xf32>
    %12 = arith.addf %4, %11 : vector<8x128xf32>
    %c1 = arith.constant 1 : index
    %c0_7 = arith.constant 0 : index
    %c0_8 = arith.constant 0 : index
    %13 = vector.load %arg2[%c1, %c0_7, %c0_8] : memref<2x8x8xbf16, #tpu.memory_space<vmem>>, vector<1x8x8xbf16>
    %14 = vector.shape_cast %13 : vector<1x8x8xbf16> to vector<8x8xbf16>
    %15 = arith.truncf %12 : vector<8x128xf32> to vector<8x128xbf16>
    %cst_9 = arith.constant dense<0.000000e+00> : vector<8x128xf32>
    %16 = tpu.matmul %14, %15, %cst_9 {dimension_numbers = #tpu.dot_dimension_numbers<[1], [0], [0], [1], [0, 0, 1, 1], [], []>} : vector<8x8xbf16>, vector<8x128xbf16>, vector<8x128xf32> -> vector<8x128xf32>
    %cst_10 = arith.constant 0.949999988 : f32
    %17 = vector.broadcast %cst_10 : f32 to vector<8x128xf32>
    %18 = arith.mulf %17, %16 : vector<8x128xf32>
    %19 = arith.addf %4, %18 : vector<8x128xf32>
    %20 = arith.truncf %19 : vector<8x128xf32> to vector<8x128xbf16>
    %c0_11 = arith.constant 0 : index
    %c0_12 = arith.constant 0 : index
    %21 = vector.load %arg3[%c0_11, %c0_12] : memref<128x256xbf16, #tpu.memory_space<vmem>>, vector<128x256xbf16>
    %cst_13 = arith.constant dense<0.000000e+00> : vector<8x256xf32>
    %22 = tpu.matmul %20, %21, %cst_13 {dimension_numbers = #tpu.dot_dimension_numbers<[1], [0], [0], [1], [0, 0, 1, 1], [], []>} : vector<8x128xbf16>, vector<128x256xbf16>, vector<8x256xf32> -> vector<8x256xf32>
    %c0_14 = arith.constant 0 : index
    %c0_15 = arith.constant 0 : index
    %23 = vector.load %arg4[%c0_14, %c0_15] : memref<1x256xf32, #tpu.memory_space<vmem>>, vector<1x256xf32>
    %24 = vector.broadcast %23 : vector<1x256xf32> to vector<8x256xf32>
    %25 = arith.addf %22, %24 : vector<8x256xf32>
    %c0_16 = arith.constant 0 : index
    %c0_17 = arith.constant 0 : index
    %c0_18 = arith.constant 0 : index
    %26 = vector.load %arg5[%c0_16, %c0_17, %c0_18] : memref<1x8x256xf32, #tpu.memory_space<vmem>>, vector<1x8x256xf32>
    %27 = vector.shape_cast %26 : vector<1x8x256xf32> to vector<8x256xf32>
    %28 = vector.shape_cast %25 : vector<8x256xf32> to vector<1x8x256xf32>
    tpu.vector_store %arg5[%c0_16, %c0_17, %c0_18], %28 {strides = array<i32>} : memref<1x8x256xf32, #tpu.memory_space<vmem>>, vector<1x8x256xf32>,
    return
  }
  func.func @transform_0(%arg0: i32) -> (i32, i32, i32) {
    %c0_i32 = arith.constant 0 : i32
    %c0_i32_0 = arith.constant 0 : i32
    %c0_i32_1 = arith.constant 0 : i32
    return %arg0, %c0_i32, %c0_i32_0 : i32, i32, i32
  }
  func.func @transform_1(%arg0: i32) -> (i32, i32, i32) {
    %c0_i32 = arith.constant 0 : i32
    %c0_i32_0 = arith.constant 0 : i32
    %c0_i32_1 = arith.constant 0 : i32
    %c0_i32_2 = arith.constant 0 : i32
    return %c0_i32, %c0_i32_0, %c0_i32_1 : i32, i32, i32
  }
  func.func @transform_2(%arg0: i32) -> (i32, i32) {
    %c0_i32 = arith.constant 0 : i32
    %c0_i32_0 = arith.constant 0 : i32
    %c0_i32_1 = arith.constant 0 : i32
    return %c0_i32, %c0_i32_0 : i32, i32
  }
  func.func @transform_3(%arg0: i32) -> (i32, i32) {
    %c0_i32 = arith.constant 0 : i32
    %c0_i32_0 = arith.constant 0 : i32
    %c0_i32_1 = arith.constant 0 : i32
    return %c0_i32, %c0_i32_0 : i32, i32
  }
  func.func @transform_4(%arg0: i32) -> (i32, i32, i32) {
    %c0_i32 = arith.constant 0 : i32
    %c0_i32_0 = arith.constant 0 : i32
    %c0_i32_1 = arith.constant 0 : i32
    return %arg0, %c0_i32, %c0_i32_0 : i32, i32, i32
  }
}

module attributes {stable_mosaic.version = 11 : i64} {
  func.func @_gc_kernel_plain(%arg0: i32, %arg1: memref<1x8x128xbf16, #tpu.memory_space<vmem>>, %arg2: memref<2x8x8xbf16, #tpu.memory_space<vmem>>, %arg3: memref<128x256xbf16, #tpu.memory_space<vmem>>, %arg4: memref<1x256xf32, #tpu.memory_space<vmem>>, %arg5: memref<1x8x256xf32, #tpu.memory_space<vmem>>) attributes {dimension_semantics = [#tpu.dimension_semantics<parallel>], iteration_bounds = array<i64: 1>, scalar_prefetch = 0 : i64, scratch_operands = 0 : i64, tpu.core_type = #tpu.core_type<tc>, window_params = [{transform_indices = @transform_0, window_bounds = array<i64: 1, 8, 128>}, {pipeline_mode = #tpu.pipeline_mode<synchronous>, transform_indices = @transform_1, window_bounds = array<i64: 2, 8, 8>}, {pipeline_mode = #tpu.pipeline_mode<synchronous>, transform_indices = @transform_2, window_bounds = array<i64: 128, 256>}, {pipeline_mode = #tpu.pipeline_mode<synchronous>, transform_indices = @transform_3, window_bounds = array<i64: 1, 256>}, {transform_indices = @transform_4, window_bounds = array<i64: 1, 8, 256>}]} {
    %c0 = arith.constant 0 : index
    %c0_0 = arith.constant 0 : index
    %c0_1 = arith.constant 0 : index
    %0 = vector.load %arg1[%c0, %c0_0, %c0_1] : memref<1x8x128xbf16, #tpu.memory_space<vmem>>, vector<1x8x128xbf16>
    %1 = vector.shape_cast %0 : vector<1x8x128xbf16> to vector<8x128xbf16>
    %2 = arith.extf %1 : vector<8x128xbf16> to vector<8x128xf32>
    %cst = arith.constant 5.000000e-02 : f32
    %3 = vector.broadcast %cst : f32 to vector<8x128xf32>
    %4 = arith.mulf %3, %2 : vector<8x128xf32>
    %5 = arith.extf %1 : vector<8x128xbf16> to vector<8x128xf32>
    %c0_2 = arith.constant 0 : index
    %c0_3 = arith.constant 0 : index
    %c0_4 = arith.constant 0 : index
    %6 = vector.load %arg2[%c0_2, %c0_3, %c0_4] : memref<2x8x8xbf16, #tpu.memory_space<vmem>>, vector<1x8x8xbf16>
    %7 = vector.shape_cast %6 : vector<1x8x8xbf16> to vector<8x8xbf16>
    %8 = arith.truncf %5 : vector<8x128xf32> to vector<8x128xbf16>
    %cst_5 = arith.constant dense<0.000000e+00> : vector<8x128xf32>
    %9 = tpu.matmul %7, %8, %cst_5 {dimension_numbers = #tpu.dot_dimension_numbers<[1], [0], [0], [1], [0, 0, 1, 1], [], []>} : vector<8x8xbf16>, vector<8x128xbf16>, vector<8x128xf32> -> vector<8x128xf32>
    %cst_6 = arith.constant 0.949999988 : f32
    %10 = vector.broadcast %cst_6 : f32 to vector<8x128xf32>
    %11 = arith.mulf %10, %9 : vector<8x128xf32>
    %12 = arith.addf %4, %11 : vector<8x128xf32>
    %c1 = arith.constant 1 : index
    %c0_7 = arith.constant 0 : index
    %c0_8 = arith.constant 0 : index
    %13 = vector.load %arg2[%c1, %c0_7, %c0_8] : memref<2x8x8xbf16, #tpu.memory_space<vmem>>, vector<1x8x8xbf16>
    %14 = vector.shape_cast %13 : vector<1x8x8xbf16> to vector<8x8xbf16>
    %15 = arith.truncf %12 : vector<8x128xf32> to vector<8x128xbf16>
    %cst_9 = arith.constant dense<0.000000e+00> : vector<8x128xf32>
    %16 = tpu.matmul %14, %15, %cst_9 {dimension_numbers = #tpu.dot_dimension_numbers<[1], [0], [0], [1], [0, 0, 1, 1], [], []>} : vector<8x8xbf16>, vector<8x128xbf16>, vector<8x128xf32> -> vector<8x128xf32>
    %cst_10 = arith.constant 0.949999988 : f32
    %17 = vector.broadcast %cst_10 : f32 to vector<8x128xf32>
    %18 = arith.mulf %17, %16 : vector<8x128xf32>
    %19 = arith.addf %4, %18 : vector<8x128xf32>
    %20 = arith.truncf %19 : vector<8x128xf32> to vector<8x128xbf16>
    %c0_11 = arith.constant 0 : index
    %c0_12 = arith.constant 0 : index
    %21 = vector.load %arg3[%c0_11, %c0_12] : memref<128x256xbf16, #tpu.memory_space<vmem>>, vector<128x256xbf16>
    %cst_13 = arith.constant dense<0.000000e+00> : vector<8x256xf32>
    %22 = tpu.matmul %20, %21, %cst_13 {dimension_numbers = #tpu.dot_dimension_numbers<[1], [0], [0], [1], [0, 0, 1, 1], [], []>} : vector<8x128xbf16>, vector<128x256xbf16>, vector<8x256xf32> -> vector<8x256xf32>
    %c0_14 = arith.constant 0 : index
    %c0_15 = arith.constant 0 : index
    %23 = vector.load %arg4[%c0_14, %c0_15] : memref<1x256xf32, #tpu.memory_space<vmem>>, vector<1x256xf32>
    %24 = vector.broadcast %23 : vector<1x256xf32> to vector<8x256xf32>
    %25 = arith.addf %22, %24 : vector<8x256xf32>
    %c0_16 = arith.constant 0 : index
    %c0_17 = arith.constant 0 : index
    %c0_18 = arith.constant 0 : index
    %26 = vector.load %arg5[%c0_16, %c0_17, %c0_18] : memref<1x8x256xf32, #tpu.memory_space<vmem>>, vector<1x8x256xf32>
    %27 = vector.shape_cast %26 : vector<1x8x256xf32> to vector<8x256xf32>
    %28 = vector.shape_cast %25 : vector<8x256xf32> to vector<1x8x256xf32>
    tpu.vector_store %arg5[%c0_16, %c0_17, %c0_18], %28 {strides = array<i32>} : memref<1x8x256xf32, #tpu.memory_space<vmem>>, vector<1x8x256xf32>,
    return
  }
  func.func @transform_0(%arg0: i32) -> (i32, i32, i32) {
    %c0_i32 = arith.constant 0 : i32
    %c0_i32_0 = arith.constant 0 : i32
    %c0_i32_1 = arith.constant 0 : i32
    return %arg0, %c0_i32, %c0_i32_0 : i32, i32, i32
  }
  func.func @transform_1(%arg0: i32) -> (i32, i32, i32) {
    %c0_i32 = arith.constant 0 : i32
    %c0_i32_0 = arith.constant 0 : i32
    %c0_i32_1 = arith.constant 0 : i32
    %c0_i32_2 = arith.constant 0 : i32
    return %c0_i32, %c0_i32_0, %c0_i32_1 : i32, i32, i32
  }
  func.func @transform_2(%arg0: i32) -> (i32, i32) {
    %c0_i32 = arith.constant 0 : i32
    %c0_i32_0 = arith.constant 0 : i32
    %c0_i32_1 = arith.constant 0 : i32
    return %c0_i32, %c0_i32_0 : i32, i32
  }
  func.func @transform_3(%arg0: i32) -> (i32, i32) {
    %c0_i32 = arith.constant 0 : i32
    %c0_i32_0 = arith.constant 0 : i32
    %c0_i32_1 = arith.constant 0 : i32
    return %c0_i32, %c0_i32_0 : i32, i32
  }
  func.func @transform_4(%arg0: i32) -> (i32, i32, i32) {
    %c0_i32 = arith.constant 0 : i32
    %c0_i32_0 = arith.constant 0 : i32
    %c0_i32_1 = arith.constant 0 : i32
    return %arg0, %c0_i32, %c0_i32_0 : i32, i32, i32
  }
}

</mosaic_0001>

<bundles_post_ra>
// kernel: tpu_custom_call.1
= control target key start
LH: loop header
LB: loop body
LE: loop exit
PB: predicated region body
PF: predicated region fallthrough
CT: control target
= control target key end

     0   :  { %9 = vsyncpa [#allocation3], 0  ;;  %s585_s0 = inlined_call_operand.hbm [shape: bf16[1,8,128], index: 0, kind: input, shape index: {}]   ;;  %s586_s1 = inlined_call_operand.hbm [shape: bf16[2,8,8], index: 1, kind: input, shape index: {}]   ;;  %s587_s2 = inlined_call_operand.hbm [shape: bf16[128,256], index: 2, kind: input, shape index: {}]   ;;  %s588_s3 = inlined_call_operand.vmem [shape: f32[1,256], index: 3, kind: input, shape index: {}]   ;;  %s589_s4 = inlined_call_operand.hbm [shape: f32[1,8,256], index: 4, kind: output, shape index: {}]  }
   0x1   :  { %10 = vsyncpa [#allocation6], 0 }
   0x2   :  { %11 = vsyncpa [#allocation4], 0  ;;  %s494_s15 = smov [#allocation5]   ;;  %s400_s19 = scalar_lea.hbm %s586_s1, 128 }
   0x3   :  { %s27_s16 = sshll.u32 %s494_s15, 4  ;;  %p401_p0 = scmp.ne.s32.totalorder %s586_s1, %s400_s19  ;;  %s28_s16 = int_to_ptr.vmem [resolvable:$true] %s27_s16 }
   0x4   :  { %p404_p1 = scmp.lt.u32.totalorder %s400_s19, %s586_s1 }
   0x6   :  { %p406_p2 = pnand %p404_p1, %p401_p0 }
   0x8   :  { %409 = shalt.err (!%p406_p2)
}
   0x9   :  { %s410_s24 = scalar_lea.vmem %s28_s16, 128  ;;  %p415_p4 = scmp.lt.s32.totalorder %s28_s16, %s28_s16 }
   0xa   :  { %p411_p3 = scmp.ne.s32.totalorder %s28_s16, %s410_s24  ;;  %p416_p5 = scmp.lt.s32.totalorder %s410_s24, %s410_s24 }
   0xc   :  { %p417_p6 = por %p416_p5, %p415_p4 }
   0xe   :  { %p418_p7 = pnand %p417_p6, %p411_p3 }
  0x10   :  { %421 = shalt.err (!%p418_p7)
}
  0x11   :  { %s495_s25 = smov 64   ;;  %s496_s26 = smov 4  }
  0x12   :  { %33 = dma.hbm_to_vmem [thread:$0]  %s586_s1, 128, %s28_s16, [#allocation6], %s495_s25, %s495_s25, %s496_s26  }
  0x13   :  { %s497_s29 = smov [#allocation2]   ;;  %s498_s5 = smov [#allocation7]  }
  0x14   :  { %s18_s30 = sshll.u32 %s497_s29, 4  ;;  %s39_s6 = sshll.u32 %s498_s5, 4  ;;  %s19_s30 = int_to_ptr.vmem [resolvable:$true] %s18_s30  ;;  %s40_s6 = int_to_ptr.vmem [resolvable:$true] %s39_s6 }
  0x15   :  { %s422_s9 = scalar_lea.hbm %s585_s0, 64 }
  0x16   :  { %p423_p8 = scmp.ne.s32.totalorder %s585_s0, %s422_s9  ;;  %p426_p9 = scmp.lt.u32.totalorder %s422_s9, %s585_s0 }
  0x18   :  { %p428_p10 = pnand %p426_p9, %p423_p8 }
  0x1a   :  { %431 = shalt.err (!%p428_p10)
}
  0x1b   :  { %s432_s1 = scalar_lea.vmem %s19_s30, 64  ;;  %p437_p12 = scmp.lt.s32.totalorder %s19_s30, %s19_s30 }
  0x1c   :  { %p433_p11 = scmp.ne.s32.totalorder %s19_s30, %s432_s1  ;;  %p438_p13 = scmp.lt.s32.totalorder %s432_s1, %s432_s1 }
  0x1e   :  { %p439_p0 = por %p438_p13, %p437_p12 }
  0x20   :  { %p440_p1 = pnand %p439_p0, %p433_p11 }
  0x22   :  { %443 = shalt.err (!%p440_p1)
}
  0x23   :  { %21 = dma.hbm_to_vmem [thread:$0]  %s585_s0, 64, %s19_s30, [#allocation3]  }
  0x24   :  { %s444_s18 = scalar_lea.hbm %s587_s2, 2048 }
  0x25   :  { %p445_p2 = scmp.ne.s32.totalorder %s587_s2, %s444_s18  ;;  %p448_p3 = scmp.lt.u32.totalorder %s444_s18, %s587_s2 }
  0x27   :  { %p450_p4 = pnand %p448_p3, %p445_p2 }
  0x29   :  { %453 = shalt.err (!%p450_p4)
}
  0x2a   :  { %s454_s23 = scalar_lea.vmem %s40_s6, 2048  ;;  %p459_p6 = scmp.lt.s32.totalorder %s40_s6, %s40_s6 }
  0x2b   :  { %p455_p5 = scmp.ne.s32.totalorder %s40_s6, %s454_s23  ;;  %p460_p7 = scmp.lt.s32.totalorder %s454_s23, %s454_s23 }
  0x2d   :  { %p461_p8 = por %p460_p7, %p459_p6 }
  0x2f   :  { %p462_p9 = pnand %p461_p8, %p455_p5 }
  0x31   :  { %465 = shalt.err (!%p462_p9)
}
  0x32   :  { %s499_s0 = smov 128   ;;  %s500_s24 = smov 8  }
  0x33   :  { %45 = dma.hbm_to_vmem [thread:$0]  %s587_s2, 2048, %s40_s6, [#allocation6], %s499_s0, %s499_s0, %s500_s24  }
  0x34   :  { %488 = dma.done.wait [#allocation3], 64  }
  0x35   :  { %489 = vsyncadd [#allocation3], 4294967232 }
  0x36   :  { %490 = dma.done.wait [#allocation6], 2176  }
  0x37   :  { %491 = vsyncadd [#allocation6], 4294965120  ;;  %v501_v0 = vmov 0.0   ;;  %vm502_vm0 = vmmov 0   ;;  %vm66_vm1 = vcmask 1043456   ;;  %vm62_vm2 = vcmask 64512  }
  0x38   :  { %353 = vmatprep.subr.bf16.mxu1 %v501_v0  ;;  %355 = vmatprep.mubr.msk.bf16.mxu1 %vm502_vm0, %v501_v0  ;;  %v58_v1 = vld [vmem:[#allocation2] sm:$0xf]  ;;  %v61_v2 = vld [vmem:[#allocation5] sm:$0xf]  ;;  %v376_v4 = vld [vmem:[#allocation7 + $0x4] ss:$8 sps:$4 sm:$0xff]   ;;  %v182_v39 = vlaneseq }
  0x39   :  { %v68_v3 = vsel %vm66_vm1, %v58_v1, 0  ;;  %v378_v5 = vld [vmem:[#allocation7] ss:$8 sps:$4 sm:$0xff]   ;;  %v379_v6 = vld [vmem:[#allocation7 + $0x14] ss:$8 sps:$4 sm:$0xff]   ;;  %272 = vmatprep.subr.bf16.mxu0 %v376_v4  ;;  %v59_v17 = vunpack.c.l.bf16 %v58_v1  ;;  %v503_v31 = vmov 0  }
  0x3a   :  { %354 = vmatpush3.bf16.msra.mxu1 %v68_v3  ;;  %273 = vmatpush1.bf16.msra.mxu0 %v378_v5  ;;  %v381_v7 = vld [vmem:[#allocation7 + $0x10] ss:$8 sps:$4 sm:$0xff]   ;;  %v382_v8 = vld [vmem:[#allocation7 + $0x24] ss:$8 sps:$4 sm:$0xff]   ;;  %v384_v9 = vld [vmem:[#allocation7 + $0x20] ss:$8 sps:$4 sm:$0xff]  }
  0x3b   :  { %359 = vmatprep.subr.bf16.mxu1 %v501_v0  ;;  %274 = vmatprep.subr.bf16.mxu0 %v379_v6  ;;  %v385_v10 = vld [vmem:[#allocation7 + $0x34] ss:$8 sps:$4 sm:$0xff]   ;;  %v387_v11 = vld [vmem:[#allocation7 + $0x30] ss:$8 sps:$4 sm:$0xff]   ;;  %v388_v12 = vld [vmem:[#allocation7 + $0x44] ss:$8 sps:$4 sm:$0xff]  }
  0x3c   :  { %v390_v13 = vld [vmem:[#allocation7 + $0x40] ss:$8 sps:$4 sm:$0xff]   ;;  %v391_v14 = vld [vmem:[#allocation7 + $0x54] ss:$8 sps:$4 sm:$0xff]   ;;  %v393_v15 = vld [vmem:[#allocation7 + $0x50] ss:$8 sps:$4 sm:$0xff]   ;;  %304 = vmatprep.mubr.bf16.mxu0 %v503_v31 }
  0x3d   :  { %356 = vmatmul.mubr.msk.bf16.vlgmr.msra.gmra.mrb[0].mxu1 %vm62_vm2, %v61_v2  ;;  %v394_v16 = vld [vmem:[#allocation7 + $0x64] ss:$8 sps:$4 sm:$0xff]   ;;  %v60_v18 = vmul.f32 0.05, %v59_v17  ;;  %v113_v27 = vld [vmem:[#allocation5 + $0x4] sm:$0xf] }
  0x3e   :  { %361 = vmatprep.mubr.msk.bf16.mxu1 %vm502_vm0, %v501_v0  ;;  %275 = vmatpush1.bf16.msra.mxu0 %v381_v7  ;;  %v396_v28 = vld [vmem:[#allocation7 + $0x60] ss:$8 sps:$4 sm:$0xff]   ;;  %v397_v29 = vld [vmem:[#allocation7 + $0x74] ss:$8 sps:$4 sm:$0xff]   ;;  %v399_v30 = vld [vmem:[#allocation7 + $0x70] ss:$8 sps:$4 sm:$0xff]  }
  0x3f   :  { %276 = vmatprep.subr.bf16.mxu0 %v382_v8  ;;  %v183_v40 = vshrl.u32 %v182_v39, 7  ;;  %v180_v42 = vld [vmem:[%s588_s3] sm:$0x3]  ;;  %s504_s28 = smov [#allocation8]  }
  0x40   :  { %s321_s29 = sshll.u32 %s504_s28, 4  ;;  %s322_s29 = int_to_ptr.vmem [resolvable:$true] %s321_s29 }
  0x41   :  { %v184_v41 = vsub.s32 0, %v183_v40  ;;  %v188_v43 = vsub.s32 1, %v183_v40  ;;  %s466_s30 = scalar_lea.vmem %s322_s29, 256  ;;  %p471_p11 = scmp.lt.s32.totalorder %s322_s29, %s322_s29 }
  0x42   :  { %277 = vmatpush1.bf16.msra.mxu0 %v384_v9  ;;  %p467_p10 = scmp.ne.s32.totalorder %s322_s29, %s466_s30  ;;  %p472_p12 = scmp.lt.s32.totalorder %s466_s30, %s466_s30 }
  0x43   :  { %278 = vmatprep.subr.bf16.mxu0 %v385_v10  ;;  %v185_v44 = vrot.slane %v180_v42, %v184_v41  ;;  %v189_v45 = vrot.slane %v180_v42, %v188_v43 }
  0x44   :  { %p473_p13 = por %p472_p12, %p471_p11 }
  0x46   :  { %279 = vmatpush1.bf16.msra.mxu0 %v387_v11  ;;  %p474_p0 = pnand %p473_p13, %p467_p10 }
  0x47   :  { %280 = vmatprep.subr.bf16.mxu0 %v388_v12 }
  0x4a   :  { %281 = vmatpush1.bf16.msra.mxu0 %v390_v13 }
  0x4b   :  { %282 = vmatprep.subr.bf16.mxu0 %v391_v14 }
  0x4e   :  { %283 = vmatpush1.bf16.msra.mxu0 %v393_v15 }
  0x4f   :  { %284 = vmatprep.subr.bf16.mxu0 %v394_v16 }
  0x52   :  { %285 = vmatpush1.bf16.msra.mxu0 %v396_v28 }
  0x53   :  { %286 = vmatprep.subr.bf16.mxu0 %v397_v29 }
  0x56   :  { %287 = vmatpush1.bf16.msra.mxu0 %v399_v30 }
 0x110   :  { %v104_v19 = vpop.f32.mrb[0].mxu1 }
 0x111   :  { %v110_v20 = vmul.f32 0.95, %v104_v19  ;;  %v357_v21 = vpop.f32.mrb[1].mxu1 }
 0x112   :  { %v107_v22 = vpop.f32.mrb[2].mxu1 }
 0x113   :  { %v111_v23 = vadd.f32 %v110_v20, %v60_v18  ;;  %v358_v24 = vpop.f32.mrb[3].mxu1 }
 0x115   :  { %v114_v25 = vpack.c.bf16 %v111_v23, %v111_v23 }
 0x117   :  { %v119_v26 = vsel %vm66_vm1, %v114_v25, 0 }
 0x118   :  { %360 = vmatpush3.bf16.msra.mxu1 %v119_v26 }
 0x11b   :  { %362 = vmatmul.mubr.msk.bf16.vlgmr.msra.gmra.mrb[4].mxu1 %vm62_vm2, %v113_v27 }
 0x1ee   :  { %v155_v32 = vpop.f32.mrb[4].mxu1 }
 0x1ef   :  { %v161_v33 = vmul.f32 0.95, %v155_v32  ;;  %v363_v34 = vpop.f32.mrb[5].mxu1 }
 0x1f0   :  { %v158_v35 = vpop.f32.mrb[6].mxu1 }
 0x1f1   :  { %v162_v36 = vadd.f32 %v161_v33, %v60_v18  ;;  %v364_v37 = vpop.f32.mrb[7].mxu1 }
 0x1f3   :  { %v163_v38 = vpack.c.bf16 %v162_v36, %v162_v36 }
 0x1f5   :  { %305 = vmatmul.mubr.bf16.vlgmr.msra.gmra.mrb[0].mxu0 %v163_v38 }
 0x2c8   :  { %v306_v46 = vpop.f32.mrb[0].mxu0 }
 0x2c9   :  { %v307_v47 = vadd.f32 %v306_v46, %v185_v44  ;;  %v308_v48 = vpop.f32.mrb[1].mxu0 }
 0x2ca   :  { %v309_v49 = vadd.f32 %v308_v48, %v189_v45  ;;  %v310_v50 = vpop.f32.mrb[2].mxu0 }
 0x2cb   :  { %313 = vst [vmem:[#allocation8] sm:$0xff] %v307_v47  ;;  %v311_v51 = vpop.f32.mrb[3].mxu0 }
 0x2cc   :  { %314 = vst [vmem:[#allocation8 + $0x8] sm:$0xff] %v309_v49 }
 0x2cd   :  { %477 = shalt.err (!%p474_p0)
}
 0x2ce   :  { %s478_s6 = scalar_lea.hbm %s589_s4, 256 }
 0x2cf   :  { %p479_p1 = scmp.ne.s32.totalorder %s589_s4, %s478_s6  ;;  %p482_p2 = scmp.lt.u32.totalorder %s478_s6, %s589_s4 }
 0x2d1   :  { %p484_p3 = pnand %p482_p2, %p479_p1 }
 0x2d3   :  { %487 = shalt.err (!%p484_p3)
}
 0x2d4   :  { %324 = dma.vmem_to_hbm [thread:$0]  %s322_s29, 256, %s589_s4, [#allocation4]  }
 0x2d5   :  { %492 = dma.done.wait [#allocation4], 256  }
 0x2d6   :  { %493 = vsyncadd [#allocation4], 4294967040 }
 0x2d7   :  { %328 = vsyncpa [#allocation3], 1 }
 0x2d8   :  { %329 = vsyncpa [#allocation6], 1 }
 0x2d9   :  { %330 = vsyncpa [#allocation4], 1 }

// kernel: tpu_custom_call.1
= control target key start
LH: loop header
LB: loop body
LE: loop exit
PB: predicated region body
PF: predicated region fallthrough
CT: control target
= control target key end

     0   :  { %9 = vsyncpa [#allocation3], 0  ;;  %s585_s0 = inlined_call_operand.hbm [shape: bf16[1,8,128], index: 0, kind: input, shape index: {}]   ;;  %s586_s1 = inlined_call_operand.hbm [shape: bf16[2,8,8], index: 1, kind: input, shape index: {}]   ;;  %s587_s2 = inlined_call_operand.hbm [shape: bf16[128,256], index: 2, kind: input, shape index: {}]   ;;  %s588_s3 = inlined_call_operand.vmem [shape: f32[1,256], index: 3, kind: input, shape index: {}]   ;;  %s589_s4 = inlined_call_operand.hbm [shape: f32[1,8,256], index: 4, kind: output, shape index: {}]  }
   0x1   :  { %10 = vsyncpa [#allocation6], 0 }
   0x2   :  { %11 = vsyncpa [#allocation4], 0  ;;  %s494_s15 = smov [#allocation5]   ;;  %s400_s19 = scalar_lea.hbm %s586_s1, 128 }
   0x3   :  { %s27_s16 = sshll.u32 %s494_s15, 4  ;;  %p401_p0 = scmp.ne.s32.totalorder %s586_s1, %s400_s19  ;;  %s28_s16 = int_to_ptr.vmem [resolvable:$true] %s27_s16 }
   0x4   :  { %p404_p1 = scmp.lt.u32.totalorder %s400_s19, %s586_s1 }
   0x6   :  { %p406_p2 = pnand %p404_p1, %p401_p0 }
   0x8   :  { %409 = shalt.err (!%p406_p2)
}
   0x9   :  { %s410_s24 = scalar_lea.vmem %s28_s16, 128  ;;  %p415_p4 = scmp.lt.s32.totalorder %s28_s16, %s28_s16 }
   0xa   :  { %p411_p3 = scmp.ne.s32.totalorder %s28_s16, %s410_s24  ;;  %p416_p5 = scmp.lt.s32.totalorder %s410_s24, %s410_s24 }
   0xc   :  { %p417_p6 = por %p416_p5, %p415_p4 }
   0xe   :  { %p418_p7 = pnand %p417_p6, %p411_p3 }
  0x10   :  { %421 = shalt.err (!%p418_p7)
}
  0x11   :  { %s495_s25 = smov 64   ;;  %s496_s26 = smov 4  }
  0x12   :  { %33 = dma.hbm_to_vmem [thread:$0]  %s586_s1, 128, %s28_s16, [#allocation6], %s495_s25, %s495_s25, %s496_s26  }
  0x13   :  { %s497_s29 = smov [#allocation2]   ;;  %s498_s5 = smov [#allocation7]  }
  0x14   :  { %s18_s30 = sshll.u32 %s497_s29, 4  ;;  %s39_s6 = sshll.u32 %s498_s5, 4  ;;  %s19_s30 = int_to_ptr.vmem [resolvable:$true] %s18_s30  ;;  %s40_s6 = int_to_ptr.vmem [resolvable:$true] %s39_s6 }
  0x15   :  { %s422_s9 = scalar_lea.hbm %s585_s0, 64 }
  0x16   :  { %p423_p8 = scmp.ne.s32.totalorder %s585_s0, %s422_s9  ;;  %p426_p9 = scmp.lt.u32.totalorder %s422_s9, %s585_s0 }
  0x18   :  { %p428_p10 = pnand %p426_p9, %p423_p8 }
  0x1a   :  { %431 = shalt.err (!%p428_p10)
}
  0x1b   :  { %s432_s1 = scalar_lea.vmem %s19_s30, 64  ;;  %p437_p12 = scmp.lt.s32.totalorder %s19_s30, %s19_s30 }
  0x1c   :  { %p433_p11 = scmp.ne.s32.totalorder %s19_s30, %s432_s1  ;;  %p438_p13 = scmp.lt.s32.totalorder %s432_s1, %s432_s1 }
  0x1e   :  { %p439_p0 = por %p438_p13, %p437_p12 }
  0x20   :  { %p440_p1 = pnand %p439_p0, %p433_p11 }
  0x22   :  { %443 = shalt.err (!%p440_p1)
}
  0x23   :  { %21 = dma.hbm_to_vmem [thread:$0]  %s585_s0, 64, %s19_s30, [#allocation3]  }
  0x24   :  { %s444_s18 = scalar_lea.hbm %s587_s2, 2048 }
  0x25   :  { %p445_p2 = scmp.ne.s32.totalorder %s587_s2, %s444_s18  ;;  %p448_p3 = scmp.lt.u32.totalorder %s444_s18, %s587_s2 }
  0x27   :  { %p450_p4 = pnand %p448_p3, %p445_p2 }
  0x29   :  { %453 = shalt.err (!%p450_p4)
}
  0x2a   :  { %s454_s23 = scalar_lea.vmem %s40_s6, 2048  ;;  %p459_p6 = scmp.lt.s32.totalorder %s40_s6, %s40_s6 }
  0x2b   :  { %p455_p5 = scmp.ne.s32.totalorder %s40_s6, %s454_s23  ;;  %p460_p7 = scmp.lt.s32.totalorder %s454_s23, %s454_s23 }
  0x2d   :  { %p461_p8 = por %p460_p7, %p459_p6 }
  0x2f   :  { %p462_p9 = pnand %p461_p8, %p455_p5 }
  0x31   :  { %465 = shalt.err (!%p462_p9)
}
  0x32   :  { %s499_s0 = smov 128   ;;  %s500_s24 = smov 8  }
  0x33   :  { %45 = dma.hbm_to_vmem [thread:$0]  %s587_s2, 2048, %s40_s6, [#allocation6], %s499_s0, %s499_s0, %s500_s24  }
  0x34   :  { %488 = dma.done.wait [#allocation3], 64  }
  0x35   :  { %489 = vsyncadd [#allocation3], 4294967232 }
  0x36   :  { %490 = dma.done.wait [#allocation6], 2176  }
  0x37   :  { %491 = vsyncadd [#allocation6], 4294965120  ;;  %v501_v0 = vmov 0.0   ;;  %vm502_vm0 = vmmov 0   ;;  %vm66_vm1 = vcmask 1043456   ;;  %vm62_vm2 = vcmask 64512  }
  0x38   :  { %353 = vmatprep.subr.bf16.mxu1 %v501_v0  ;;  %355 = vmatprep.mubr.msk.bf16.mxu1 %vm502_vm0, %v501_v0  ;;  %v58_v1 = vld [vmem:[#allocation2] sm:$0xf]  ;;  %v61_v2 = vld [vmem:[#allocation5] sm:$0xf]  ;;  %v376_v4 = vld [vmem:[#allocation7 + $0x4] ss:$8 sps:$4 sm:$0xff]   ;;  %v182_v39 = vlaneseq }
  0x39   :  { %v68_v3 = vsel %vm66_vm1, %v58_v1, 0  ;;  %v378_v5 = vld [vmem:[#allocation7] ss:$8 sps:$4 sm:$0xff]   ;;  %v379_v6 = vld [vmem:[#allocation7 + $0x14] ss:$8 sps:$4 sm:$0xff]   ;;  %272 = vmatprep.subr.bf16.mxu0 %v376_v4  ;;  %v59_v17 = vunpack.c.l.bf16 %v58_v1  ;;  %v503_v31 = vmov 0  }
  0x3a   :  { %354 = vmatpush3.bf16.msra.mxu1 %v68_v3  ;;  %273 = vmatpush1.bf16.msra.mxu0 %v378_v5  ;;  %v381_v7 = vld [vmem:[#allocation7 + $0x10] ss:$8 sps:$4 sm:$0xff]   ;;  %v382_v8 = vld [vmem:[#allocation7 + $0x24] ss:$8 sps:$4 sm:$0xff]   ;;  %v384_v9 = vld [vmem:[#allocation7 + $0x20] ss:$8 sps:$4 sm:$0xff]  }
  0x3b   :  { %359 = vmatprep.subr.bf16.mxu1 %v501_v0  ;;  %274 = vmatprep.subr.bf16.mxu0 %v379_v6  ;;  %v385_v10 = vld [vmem:[#allocation7 + $0x34] ss:$8 sps:$4 sm:$0xff]   ;;  %v387_v11 = vld [vmem:[#allocation7 + $0x30] ss:$8 sps:$4 sm:$0xff]   ;;  %v388_v12 = vld [vmem:[#allocation7 + $0x44] ss:$8 sps:$4 sm:$0xff]  }
  0x3c   :  { %v390_v13 = vld [vmem:[#allocation7 + $0x40] ss:$8 sps:$4 sm:$0xff]   ;;  %v391_v14 = vld [vmem:[#allocation7 + $0x54] ss:$8 sps:$4 sm:$0xff]   ;;  %v393_v15 = vld [vmem:[#allocation7 + $0x50] ss:$8 sps:$4 sm:$0xff]   ;;  %304 = vmatprep.mubr.bf16.mxu0 %v503_v31 }
  0x3d   :  { %356 = vmatmul.mubr.msk.bf16.vlgmr.msra.gmra.mrb[0].mxu1 %vm62_vm2, %v61_v2  ;;  %v394_v16 = vld [vmem:[#allocation7 + $0x64] ss:$8 sps:$4 sm:$0xff]   ;;  %v60_v18 = vmul.f32 0.05, %v59_v17  ;;  %v113_v27 = vld [vmem:[#allocation5 + $0x4] sm:$0xf] }
  0x3e   :  { %361 = vmatprep.mubr.msk.bf16.mxu1 %vm502_vm0, %v501_v0  ;;  %275 = vmatpush1.bf16.msra.mxu0 %v381_v7  ;;  %v396_v28 = vld [vmem:[#allocation7 + $0x60] ss:$8 sps:$4 sm:$0xff]   ;;  %v397_v29 = vld [vmem:[#allocation7 + $0x74] ss:$8 sps:$4 sm:$0xff]   ;;  %v399_v30 = vld [vmem:[#allocation7 + $0x70] ss:$8 sps:$4 sm:$0xff]  }
  0x3f   :  { %276 = vmatprep.subr.bf16.mxu0 %v382_v8  ;;  %v183_v40 = vshrl.u32 %v182_v39, 7  ;;  %v180_v42 = vld [vmem:[%s588_s3] sm:$0x3]  ;;  %s504_s28 = smov [#allocation8]  }
  0x40   :  { %s321_s29 = sshll.u32 %s504_s28, 4  ;;  %s322_s29 = int_to_ptr.vmem [resolvable:$true] %s321_s29 }
  0x41   :  { %v184_v41 = vsub.s32 0, %v183_v40  ;;  %v188_v43 = vsub.s32 1, %v183_v40  ;;  %s466_s30 = scalar_lea.vmem %s322_s29, 256  ;;  %p471_p11 = scmp.lt.s32.totalorder %s322_s29, %s322_s29 }
  0x42   :  { %277 = vmatpush1.bf16.msra.mxu0 %v384_v9  ;;  %p467_p10 = scmp.ne.s32.totalorder %s322_s29, %s466_s30  ;;  %p472_p12 = scmp.lt.s32.totalorder %s466_s30, %s466_s30 }
  0x43   :  { %278 = vmatprep.subr.bf16.mxu0 %v385_v10  ;;  %v185_v44 = vrot.slane %v180_v42, %v184_v41  ;;  %v189_v45 = vrot.slane %v180_v42, %v188_v43 }
  0x44   :  { %p473_p13 = por %p472_p12, %p471_p11 }
  0x46   :  { %279 = vmatpush1.bf16.msra.mxu0 %v387_v11  ;;  %p474_p0 = pnand %p473_p13, %p467_p10 }
  0x47   :  { %280 = vmatprep.subr.bf16.mxu0 %v388_v12 }
  0x4a   :  { %281 = vmatpush1.bf16.msra.mxu0 %v390_v13 }
  0x4b   :  { %282 = vmatprep.subr.bf16.mxu0 %v391_v14 }
  0x4e   :  { %283 = vmatpush1.bf16.msra.mxu0 %v393_v15 }
  0x4f   :  { %284 = vmatprep.subr.bf16.mxu0 %v394_v16 }
  0x52   :  { %285 = vmatpush1.bf16.msra.mxu0 %v396_v28 }
  0x53   :  { %286 = vmatprep.subr.bf16.mxu0 %v397_v29 }
  0x56   :  { %287 = vmatpush1.bf16.msra.mxu0 %v399_v30 }
 0x110   :  { %v104_v19 = vpop.f32.mrb[0].mxu1 }
 0x111   :  { %v110_v20 = vmul.f32 0.95, %v104_v19  ;;  %v357_v21 = vpop.f32.mrb[1].mxu1 }
 0x112   :  { %v107_v22 = vpop.f32.mrb[2].mxu1 }
 0x113   :  { %v111_v23 = vadd.f32 %v110_v20, %v60_v18  ;;  %v358_v24 = vpop.f32.mrb[3].mxu1 }
 0x115   :  { %v114_v25 = vpack.c.bf16 %v111_v23, %v111_v23 }
 0x117   :  { %v119_v26 = vsel %vm66_vm1, %v114_v25, 0 }
 0x118   :  { %360 = vmatpush3.bf16.msra.mxu1 %v119_v26 }
 0x11b   :  { %362 = vmatmul.mubr.msk.bf16.vlgmr.msra.gmra.mrb[4].mxu1 %vm62_vm2, %v113_v27 }
 0x1ee   :  { %v155_v32 = vpop.f32.mrb[4].mxu1 }
 0x1ef   :  { %v161_v33 = vmul.f32 0.95, %v155_v32  ;;  %v363_v34 = vpop.f32.mrb[5].mxu1 }
 0x1f0   :  { %v158_v35 = vpop.f32.mrb[6].mxu1 }
 0x1f1   :  { %v162_v36 = vadd.f32 %v161_v33, %v60_v18  ;;  %v364_v37 = vpop.f32.mrb[7].mxu1 }
 0x1f3   :  { %v163_v38 = vpack.c.bf16 %v162_v36, %v162_v36 }
 0x1f5   :  { %305 = vmatmul.mubr.bf16.vlgmr.msra.gmra.mrb[0].mxu0 %v163_v38 }
 0x2c8   :  { %v306_v46 = vpop.f32.mrb[0].mxu0 }
 0x2c9   :  { %v307_v47 = vadd.f32 %v306_v46, %v185_v44  ;;  %v308_v48 = vpop.f32.mrb[1].mxu0 }
 0x2ca   :  { %v309_v49 = vadd.f32 %v308_v48, %v189_v45  ;;  %v310_v50 = vpop.f32.mrb[2].mxu0 }
 0x2cb   :  { %313 = vst [vmem:[#allocation8] sm:$0xff] %v307_v47  ;;  %v311_v51 = vpop.f32.mrb[3].mxu0 }
 0x2cc   :  { %314 = vst [vmem:[#allocation8 + $0x8] sm:$0xff] %v309_v49 }
 0x2cd   :  { %477 = shalt.err (!%p474_p0)
}
 0x2ce   :  { %s478_s6 = scalar_lea.hbm %s589_s4, 256 }
 0x2cf   :  { %p479_p1 = scmp.ne.s32.totalorder %s589_s4, %s478_s6  ;;  %p482_p2 = scmp.lt.u32.totalorder %s478_s6, %s589_s4 }
 0x2d1   :  { %p484_p3 = pnand %p482_p2, %p479_p1 }
 0x2d3   :  { %487 = shalt.err (!%p484_p3)
}
 0x2d4   :  { %324 = dma.vmem_to_hbm [thread:$0]  %s322_s29, 256, %s589_s4, [#allocation4]  }
 0x2d5   :  { %492 = dma.done.wait [#allocation4], 256  }
 0x2d6   :  { %493 = vsyncadd [#allocation4], 4294967040 }
 0x2d7   :  { %328 = vsyncpa [#allocation3], 1 }
 0x2d8   :  { %329 = vsyncpa [#allocation6], 1 }
 0x2d9   :  { %330 = vsyncpa [#allocation4], 1 }

</bundles_post_ra>
